<compile_context>
chip_gen: v5e
topology: v5e:2x2
jax: 0.10.0
libtpu: 0.0.40
codegen_flags: <defaults>
</compile_context>

<pallas_src>
import functools

import jax
import jax.numpy as jnp
from jax.experimental import pallas as pl
from jax.experimental.pallas import tpu as pltpu


# ----------------------------- Pallas kernel ------------------------------ #

def _crop_resize_normalize_kernel(wy_ref, wxt_ref, img_ref, out_ref,
                                  *, bt, c, batch):
    """One grid step handles up to `bt` batch elements.

    wy_ref  : (bt, S, H)     f32 bilinear row-interp matrices
    wxt_ref : (bt, W, S)     f32 bilinear col-interp matrices (pre-transposed)
    img_ref : (bt, C, H, W)  f32 images
    out_ref : (bt, C, S, S)  f32 output, already in the final layout
    """
    step = pl.program_id(0)
    # Tail mask for a cdiv grid (batch need not be a multiple of bt).
    n_valid = jnp.minimum(bt, batch - step * bt)

    def body(b, carry):
        wy = wy_ref[b]                 # (S, H)
        wxt = wxt_ref[b]               # (W, S)
        for ci in range(c):            # C is small and static
            img = img_ref[b, ci]       # (H, W)
            # Stage 1: contract W on the MXU (f32 accumulation).
            tmp = jnp.dot(img, wxt, preferred_element_type=jnp.float32)   # (H, S)
            # Stage 2: contract H on the MXU.
            res = jnp.dot(wy, tmp, preferred_element_type=jnp.float32)    # (S, S)
            # K.Normalize(mean=0.5, std=1.0), stored straight to final layout.
            out_ref[b, ci] = (res - 0.5).astype(out_ref.dtype)
        return carry

    jax.lax.fori_loop(0, n_valid, body, 0)


def crop_resize_normalize(images, wy, wx, out_size,
                          vmem_limit_bytes=48 * 1024 * 1024):
    """Per-image crop+bilinear-resize (as two matmuls) + Normalize(-0.5)."""
    B, C, H, W = images.shape
    S = out_size

    # -------- wrapper-side plumbing (tiny arrays only; images untouched) ----
    images = images.astype(jnp.float32)                         # (B, C, H, W)
    wy = wy.astype(jnp.float32)                                  # (B, S, H)
    wxt = jnp.transpose(wx, (0, 2, 1)).astype(jnp.float32)       # (B, W, S)

    # -------- choose Bt under the VMEM budget -------------------------------
    # Per batch element: double-buffered input/output blocks (shared scratch
    # and per-iteration temporaries are small and covered by the headroom).
    per_b = 2 * 4 * (S * H + W * S + C * H * W + C * S * S)
    budget = max(vmem_limit_bytes - 8 * 1024 * 1024, per_b)      # headroom
    bt_cap = max(1, budget // per_b)
    bt_target = max(1, B // 4)          # keep grid >= 4 steps when possible
    bt = int(max(1, min(bt_cap, bt_target)))
    grid = (pl.cdiv(B, bt),)

    flops = 2 * B * C * S * H * (W + S)
    bytes_accessed = 4 * B * (C * H * W + S * H + W * S + C * S * S)

    return pl.pallas_call(
        functools.partial(_crop_resize_normalize_kernel, bt=bt, c=C, batch=B),
        out_shape=jax.ShapeDtypeStruct((B, C, S, S), jnp.float32),
        grid_spec=pltpu.PrefetchScalarGridSpec(
            num_scalar_prefetch=0,
            grid=grid,
            in_specs=[
                pl.BlockSpec((bt, S, H), lambda i: (i, 0, 0)),
                pl.BlockSpec((bt, W, S), lambda i: (i, 0, 0)),
                pl.BlockSpec((bt, C, H, W), lambda i: (i, 0, 0, 0)),
            ],
            out_specs=pl.BlockSpec((bt, C, S, S), lambda i: (i, 0, 0, 0)),
        ),
        compiler_params=pltpu.CompilerParams(
            dimension_semantics=("parallel",),
            vmem_limit_bytes=vmem_limit_bytes),
        cost_estimate=pl.CostEstimate(flops=flops, transcendentals=0,
                                      bytes_accessed=bytes_accessed),
    )(wy, wxt, images)


# ----------------------------- JAX glue ----------------------------------- #

def _interp_matrix(start, end, out_size, in_size):
    """Align-corners bilinear interpolation matrix (out_size, in_size)."""
    j = jnp.arange(out_size, dtype=jnp.float32)
    denom = float(max(out_size - 1, 1))   # guard out_size == 1 (sample at start)
    src = start + j * (end - start) / denom
    src = jnp.clip(src, 0.0, float(in_size - 1))
    lo = jnp.floor(src)
    frac = src - lo
    lo_i = lo.astype(jnp.int32)
    hi_i = jnp.minimum(lo_i + 1, in_size - 1)
    cols = jnp.arange(in_size)
    w_lo = (cols[None, :] == lo_i[:, None]).astype(jnp.float32) * (1.0 - frac)[:, None]
    w_hi = (cols[None, :] == hi_i[:, None]).astype(jnp.float32) * frac[:, None]
    return w_lo + w_hi


def _sample_crop_boxes(key, batch, height, width, crop_scale,
                       ratio=(3.0 / 4.0, 4.0 / 3.0)):
    """Kornia-style RandomResizedCrop box sampling (p=1.0), deterministic key.

    NOTE: kornia's 10-attempt rejection loop is approximated by clipping.
    """
    k1, k2, k3, k4 = jax.random.split(key, 4)
    area = float(height * width)
    target_scale = jax.random.uniform(
        k1, (batch,), minval=crop_scale[0], maxval=crop_scale[1])
    log_ratio = jax.random.uniform(
        k2, (batch,), minval=jnp.log(ratio[0]), maxval=jnp.log(ratio[1]))
    aspect = jnp.exp(log_ratio)
    target_area = target_scale * area
    w = jnp.clip(jnp.round(jnp.sqrt(target_area * aspect)), 1.0, float(width))
    h = jnp.clip(jnp.round(jnp.sqrt(target_area / aspect)), 1.0, float(height))
    x0 = jnp.floor(jax.random.uniform(k3, (batch,)) * (width - w + 1.0))
    y0 = jnp.floor(jax.random.uniform(k4, (batch,)) * (height - h + 1.0))
    return x0, y0, w, h


def param_aug_stack_forward(images, key, image_size_override,
                            crop_scale=(0.2, 1.0)):
    """Training-mode forward of ParamAugStack(aug_codes=['sca'])."""
    B, C, H, W = images.shape
    S = image_size_override

    x0, y0, w, h = _sample_crop_boxes(key, B, H, W, crop_scale)
    # Inclusive crop-box corners (kornia 'src' convention: x1 = x0 + w - 1).
    x1 = x0 + w - 1.0
    y1 = y0 + h - 1.0

    wy = jax.vmap(lambda a, b: _interp_matrix(a, b, S, H))(y0, y1)  # (B, S, H)
    wx = jax.vmap(lambda a, b: _interp_matrix(a, b, S, W))(x0, x1)  # (B, S, W)

    out = crop_resize_normalize(images, wy, wx, S)

    # _random_resize_crop_params, 'rescale' embedding (matches the torch ref):
    #   origin = src[:,0] = (x0, y0); src[:,1,0]-src[:,0,0] = x1-x0;
    #   src[:,2,1]-src[:,1,1] = y1-y0; all divided by image_size_override.
    params = jnp.stack([x0, y0, x1 - x0, y1 - y0], axis=1) / float(S)
    return out, {"RandomResizedCrop": params.astype(jnp.float32)}


# ----------------------------- main ---------------------------------------- #

if __name__ == "__main__":
    key = jax.random.PRNGKey(0)
    kimg, kaug = jax.random.split(key)

    B, C, H, W = 2, 4, 16, 16
    image_size_override = 16
    images = jax.random.uniform(kimg, (B, C, H, W), dtype=jnp.float32)

    out, aug_params = param_aug_stack_forward(
        images, kaug, image_size_override, crop_scale=(0.2, 1.0))
    jax.block_until_ready(out)
    jax.block_until_ready(aug_params["RandomResizedCrop"])

    # Pure-JAX f32 reference of the kernel math.
    x0, y0, w, h = _sample_crop_boxes(kaug, B, H, W, (0.2, 1.0))
    x1, y1 = x0 + w - 1.0, y0 + h - 1.0
    wy = jax.vmap(lambda a, b: _interp_matrix(a, b, image_size_override, H))(y0, y1)
    wx = jax.vmap(lambda a, b: _interp_matrix(a, b, image_size_override, W))(x0, x1)
    ref = jnp.einsum("bsh,bchw,btw->bcst", wy, images, wx) - 0.5

    assert out.shape == (B, C, image_size_override, image_size_override)
    assert out.dtype == jnp.float32
    assert aug_params["RandomResizedCrop"].shape == (B, 4)
    assert jnp.max(jnp.abs(out - ref)) < 2e-2

    print("KERNEL_OK")
</pallas_src>

<mosaic_0001>
module attributes {stable_mosaic.version = 11 : i64} {
  func.func @_crop_resize_normalize_kernel(%arg0: i32, %arg1: memref<1x16x16xf32, #tpu.memory_space<vmem>>, %arg2: memref<1x16x16xf32, #tpu.memory_space<vmem>>, %arg3: memref<1x4x16x16xf32, #tpu.memory_space<vmem>>, %arg4: memref<1x4x16x16xf32, #tpu.memory_space<vmem>>) attributes {dimension_semantics = [#tpu.dimension_semantics<parallel>], iteration_bounds = array<i64: 2>, scalar_prefetch = 0 : i64, scratch_operands = 0 : i64, tpu.core_type = #tpu.core_type<tc>, window_params = [{transform_indices = @transform_0, window_bounds = array<i64: 1, 16, 16>}, {transform_indices = @transform_1, window_bounds = array<i64: 1, 16, 16>}, {transform_indices = @transform_2, window_bounds = array<i64: 1, 4, 16, 16>}, {transform_indices = @transform_3, window_bounds = array<i64: 1, 4, 16, 16>}]} {
    %c1_i32 = arith.constant 1 : i32
    %0 = arith.muli %arg0, %c1_i32 : i32
    %c2_i32 = arith.constant 2 : i32
    %1 = arith.subi %c2_i32, %0 : i32
    %c1_i32_0 = arith.constant 1 : i32
    %2 = arith.minsi %c1_i32_0, %1 : i32
    %c0_i32 = arith.constant 0 : i32
    %c0_i32_1 = arith.constant 0 : i32
    %3 = arith.subi %2, %c0_i32_1 : i32
    %4 = arith.addi %c0_i32_1, %3 : i32
    %c1_i32_2 = arith.constant 1 : i32
    scf.for %arg5 = %c0_i32_1 to %4 step %c1_i32_2  : i32 {
      %5 = arith.index_cast %arg5 : i32 to index
      %c0 = arith.constant 0 : index
      %c0_3 = arith.constant 0 : index
      %6 = vector.load %arg1[%5, %c0, %c0_3] : memref<1x16x16xf32, #tpu.memory_space<vmem>>, vector<1x16x16xf32>
      %7 = vector.shape_cast %6 : vector<1x16x16xf32> to vector<16x16xf32>
      %8 = arith.index_cast %arg5 : i32 to index
      %c0_4 = arith.constant 0 : index
      %c0_5 = arith.constant 0 : index
      %9 = vector.load %arg2[%8, %c0_4, %c0_5] : memref<1x16x16xf32, #tpu.memory_space<vmem>>, vector<1x16x16xf32>
      %10 = vector.shape_cast %9 : vector<1x16x16xf32> to vector<16x16xf32>
      %11 = arith.index_cast %arg5 : i32 to index
      %c0_6 = arith.constant 0 : index
      %c0_7 = arith.constant 0 : index
      %c0_8 = arith.constant 0 : index
      %12 = vector.load %arg3[%11, %c0_6, %c0_7, %c0_8] : memref<1x4x16x16xf32, #tpu.memory_space<vmem>>, vector<1x1x16x16xf32>
      %13 = vector.shape_cast %12 : vector<1x1x16x16xf32> to vector<16x16xf32>
      %cst = arith.constant dense<0.000000e+00> : vector<16x16xf32>
      %14 = tpu.matmul %13, %10, %cst {dimension_numbers = #tpu.dot_dimension_numbers<[1], [0], [0], [1], [0, 0, 1, 1], [], []>} : vector<16x16xf32>, vector<16x16xf32>, vector<16x16xf32> -> vector<16x16xf32>
      %cst_9 = arith.constant dense<0.000000e+00> : vector<16x16xf32>
      %15 = tpu.matmul %7, %14, %cst_9 {dimension_numbers = #tpu.dot_dimension_numbers<[1], [0], [0], [1], [0, 0, 1, 1], [], []>} : vector<16x16xf32>, vector<16x16xf32>, vector<16x16xf32> -> vector<16x16xf32>
      %cst_10 = arith.constant 5.000000e-01 : f32
      %16 = vector.broadcast %cst_10 : f32 to vector<16x16xf32>
      %17 = arith.subf %15, %16 : vector<16x16xf32>
      %18 = arith.index_cast %arg5 : i32 to index
      %c0_11 = arith.constant 0 : index
      %c0_12 = arith.constant 0 : index
      %c0_13 = arith.constant 0 : index
      %19 = vector.load %arg4[%18, %c0_11, %c0_12, %c0_13] : memref<1x4x16x16xf32, #tpu.memory_space<vmem>>, vector<1x1x16x16xf32>
      %20 = vector.shape_cast %19 : vector<1x1x16x16xf32> to vector<16x16xf32>
      %21 = vector.shape_cast %17 : vector<16x16xf32> to vector<1x1x16x16xf32>
      tpu.vector_store %arg4[%18, %c0_11, %c0_12, %c0_13], %21 {strides = array<i32>} : memref<1x4x16x16xf32, #tpu.memory_space<vmem>>, vector<1x1x16x16xf32>,
      %22 = arith.index_cast %arg5 : i32 to index
      %c1 = arith.constant 1 : index
      %c0_14 = arith.constant 0 : index
      %c0_15 = arith.constant 0 : index
      %23 = vector.load %arg3[%22, %c1, %c0_14, %c0_15] : memref<1x4x16x16xf32, #tpu.memory_space<vmem>>, vector<1x1x16x16xf32>
      %24 = vector.shape_cast %23 : vector<1x1x16x16xf32> to vector<16x16xf32>
      %cst_16 = arith.constant dense<0.000000e+00> : vector<16x16xf32>
      %25 = tpu.matmul %24, %10, %cst_16 {dimension_numbers = #tpu.dot_dimension_numbers<[1], [0], [0], [1], [0, 0, 1, 1], [], []>} : vector<16x16xf32>, vector<16x16xf32>, vector<16x16xf32> -> vector<16x16xf32>
      %cst_17 = arith.constant dense<0.000000e+00> : vector<16x16xf32>
      %26 = tpu.matmul %7, %25, %cst_17 {dimension_numbers = #tpu.dot_dimension_numbers<[1], [0], [0], [1], [0, 0, 1, 1], [], []>} : vector<16x16xf32>, vector<16x16xf32>, vector<16x16xf32> -> vector<16x16xf32>
      %cst_18 = arith.constant 5.000000e-01 : f32
      %27 = vector.broadcast %cst_18 : f32 to vector<16x16xf32>
      %28 = arith.subf %26, %27 : vector<16x16xf32>
      %29 = arith.index_cast %arg5 : i32 to index
      %c1_19 = arith.constant 1 : index
      %c0_20 = arith.constant 0 : index
      %c0_21 = arith.constant 0 : index
      %30 = vector.load %arg4[%29, %c1_19, %c0_20, %c0_21] : memref<1x4x16x16xf32, #tpu.memory_space<vmem>>, vector<1x1x16x16xf32>
      %31 = vector.shape_cast %30 : vector<1x1x16x16xf32> to vector<16x16xf32>
      %32 = vector.shape_cast %28 : vector<16x16xf32> to vector<1x1x16x16xf32>
      tpu.vector_store %arg4[%29, %c1_19, %c0_20, %c0_21], %32 {strides = array<i32>} : memref<1x4x16x16xf32, #tpu.memory_space<vmem>>, vector<1x1x16x16xf32>,
      %33 = arith.index_cast %arg5 : i32 to index
      %c2 = arith.constant 2 : index
      %c0_22 = arith.constant 0 : index
      %c0_23 = arith.constant 0 : index
      %34 = vector.load %arg3[%33, %c2, %c0_22, %c0_23] : memref<1x4x16x16xf32, #tpu.memory_space<vmem>>, vector<1x1x16x16xf32>
      %35 = vector.shape_cast %34 : vector<1x1x16x16xf32> to vector<16x16xf32>
      %cst_24 = arith.constant dense<0.000000e+00> : vector<16x16xf32>
      %36 = tpu.matmul %35, %10, %cst_24 {dimension_numbers = #tpu.dot_dimension_numbers<[1], [0], [0], [1], [0, 0, 1, 1], [], []>} : vector<16x16xf32>, vector<16x16xf32>, vector<16x16xf32> -> vector<16x16xf32>
      %cst_25 = arith.constant dense<0.000000e+00> : vector<16x16xf32>
      %37 = tpu.matmul %7, %36, %cst_25 {dimension_numbers = #tpu.dot_dimension_numbers<[1], [0], [0], [1], [0, 0, 1, 1], [], []>} : vector<16x16xf32>, vector<16x16xf32>, vector<16x16xf32> -> vector<16x16xf32>
      %cst_26 = arith.constant 5.000000e-01 : f32
      %38 = vector.broadcast %cst_26 : f32 to vector<16x16xf32>
      %39 = arith.subf %37, %38 : vector<16x16xf32>
      %40 = arith.index_cast %arg5 : i32 to index
      %c2_27 = arith.constant 2 : index
      %c0_28 = arith.constant 0 : index
      %c0_29 = arith.constant 0 : index
      %41 = vector.load %arg4[%40, %c2_27, %c0_28, %c0_29] : memref<1x4x16x16xf32, #tpu.memory_space<vmem>>, vector<1x1x16x16xf32>
      %42 = vector.shape_cast %41 : vector<1x1x16x16xf32> to vector<16x16xf32>
      %43 = vector.shape_cast %39 : vector<16x16xf32> to vector<1x1x16x16xf32>
      tpu.vector_store %arg4[%40, %c2_27, %c0_28, %c0_29], %43 {strides = array<i32>} : memref<1x4x16x16xf32, #tpu.memory_space<vmem>>, vector<1x1x16x16xf32>,
      %44 = arith.index_cast %arg5 : i32 to index
      %c3 = arith.constant 3 : index
      %c0_30 = arith.constant 0 : index
      %c0_31 = arith.constant 0 : index
      %45 = vector.load %arg3[%44, %c3, %c0_30, %c0_31] : memref<1x4x16x16xf32, #tpu.memory_space<vmem>>, vector<1x1x16x16xf32>
      %46 = vector.shape_cast %45 : vector<1x1x16x16xf32> to vector<16x16xf32>
      %cst_32 = arith.constant dense<0.000000e+00> : vector<16x16xf32>
      %47 = tpu.matmul %46, %10, %cst_32 {dimension_numbers = #tpu.dot_dimension_numbers<[1], [0], [0], [1], [0, 0, 1, 1], [], []>} : vector<16x16xf32>, vector<16x16xf32>, vector<16x16xf32> -> vector<16x16xf32>
      %cst_33 = arith.constant dense<0.000000e+00> : vector<16x16xf32>
      %48 = tpu.matmul %7, %47, %cst_33 {dimension_numbers = #tpu.dot_dimension_numbers<[1], [0], [0], [1], [0, 0, 1, 1], [], []>} : vector<16x16xf32>, vector<16x16xf32>, vector<16x16xf32> -> vector<16x16xf32>
      %cst_34 = arith.constant 5.000000e-01 : f32
      %49 = vector.broadcast %cst_34 : f32 to vector<16x16xf32>
      %50 = arith.subf %48, %49 : vector<16x16xf32>
      %51 = arith.index_cast %arg5 : i32 to index
      %c3_35 = arith.constant 3 : index
      %c0_36 = arith.constant 0 : index
      %c0_37 = arith.constant 0 : index
      %52 = vector.load %arg4[%51, %c3_35, %c0_36, %c0_37] : memref<1x4x16x16xf32, #tpu.memory_space<vmem>>, vector<1x1x16x16xf32>
      %53 = vector.shape_cast %52 : vector<1x1x16x16xf32> to vector<16x16xf32>
      %54 = vector.shape_cast %50 : vector<16x16xf32> to vector<1x1x16x16xf32>
      tpu.vector_store %arg4[%51, %c3_35, %c0_36, %c0_37], %54 {strides = array<i32>} : memref<1x4x16x16xf32, #tpu.memory_space<vmem>>, vector<1x1x16x16xf32>,
    }
    return
  }
  func.func @transform_0(%arg0: i32) -> (i32, i32, i32) {
    %c0_i32 = arith.constant 0 : i32
    %c0_i32_0 = arith.constant 0 : i32
    %c0_i32_1 = arith.constant 0 : i32
    return %arg0, %c0_i32, %c0_i32_0 : i32, i32, i32
  }
  func.func @transform_1(%arg0: i32) -> (i32, i32, i32) {
    %c0_i32 = arith.constant 0 : i32
    %c0_i32_0 = arith.constant 0 : i32
    %c0_i32_1 = arith.constant 0 : i32
    return %arg0, %c0_i32, %c0_i32_0 : i32, i32, i32
  }
  func.func @transform_2(%arg0: i32) -> (i32, i32, i32, i32) {
    %c0_i32 = arith.constant 0 : i32
    %c0_i32_0 = arith.constant 0 : i32
    %c0_i32_1 = arith.constant 0 : i32
    %c0_i32_2 = arith.constant 0 : i32
    return %arg0, %c0_i32, %c0_i32_0, %c0_i32_1 : i32, i32, i32, i32
  }
  func.func @transform_3(%arg0: i32) -> (i32, i32, i32, i32) {
    %c0_i32 = arith.constant 0 : i32
    %c0_i32_0 = arith.constant 0 : i32
    %c0_i32_1 = arith.constant 0 : i32
    %c0_i32_2 = arith.constant 0 : i32
    return %arg0, %c0_i32, %c0_i32_0, %c0_i32_1 : i32, i32, i32, i32
  }
}

</mosaic_0001>

<bundles_post_ra>
// kernel: tpu_custom_call.1
= control target key start
LH: loop header
LB: loop body
LE: loop exit
PB: predicated region body
PF: predicated region fallthrough
CT: control target
= control target key end

     0   :  { %s1287_s0 = inlined_call_operand.hbm [shape: f32[2,16,16], index: 0, kind: input, shape index: {}]   ;;  %s1288_s1 = inlined_call_operand.hbm [shape: f32[2,16,16], index: 1, kind: input, shape index: {}]   ;;  %s1289_s2 = inlined_call_operand.hbm [shape: f32[2,4,16,16], index: 2, kind: input, shape index: {}]   ;;  %s1290_s3 = inlined_call_operand.hbm [shape: f32[2,4,16,16], index: 3, kind: output, shape index: {}]  }
   0x1   :  { %1293 = sst [smem:[#allocation13_spill]] %s1288_s1 }
   0x2   :  { %8 = vsyncpa [#allocation3], 0 }
   0x3   :  { %10 = vsyncpa [#allocation3 + $0x1], 0 }
   0x4   :  { %11 = vsyncpa [#allocation6], 0 }
   0x5   :  { %13 = vsyncpa [#allocation6 + $0x1], 0 }
   0x6   :  { %14 = vsyncpa [#allocation4], 0 }
   0x7   :  { %16 = vsyncpa [#allocation4 + $0x1], 0  ;;  %s1038_s12 = smov 0   ;;  %s1040_s13 = smov 0  }
   0x8   :  { %s1042_s14 = smov 0   ;;  %s1044_s15 = smov 0  }
   0x9 LB: > { %s1059_s16 = sadd.s32 4294967295, %s1008_s15   ;;  %s702_s17 = sadd.s32 4294967294, %s1008_s15   ;;  %s1008_s15 = sphi %s1044_s15, %s1306_s15   ;;  %s1004_s14 = sphi %s1042_s14, %s1305_s14   ;;  %s1000_s13 = sphi %s1040_s13, %s1304_s13   ;;  %s996_s12 = sphi %s1038_s12, %s1303_s12  }
   0xa   : > { %s1063_s18 = sadd.s32 1, %s1008_s15   ;;  %s29_s19 = sadd.s32 1, %s1004_s14 }
   0xb   : > { %s26_s20 = ssub.s32 %s1008_s15, %s1063_s18  ;;  %p36_p0 = scmp.ne.s32.totalorder %s1004_s14, %s1000_s13 }
   0xc   : > { %p27_p1 = scmp.eq.s32.totalorder %s26_s20, 0  ;;  %p37_p2 = scmp.eq.s32.totalorder %s1008_s15, 0 }
   0xd   : > { %p42_p3 = scmp.ne.s32.totalorder %s1000_s13, %s996_s12  ;;  %p43_p4 = scmp.eq.s32.totalorder %s1059_s16, 0 }
   0xe   : > { %s1075_s21 = scalar_select %p27_p1, %s1004_s14, %s29_s19  }
   0xf   : > { %p38_p5 = por %p37_p2, %p36_p0  ;;  %p1077_p6 = por %p43_p4, %p42_p3 }
  0x10   : > { %1294 = sst [smem:[#allocation12_spill]] %s1075_s21  ;;  %p118_p7 = scmp.eq.s32.totalorder %s1059_s16, 1 }
  0x11   : > { %p124_p8 = scmp.eq.s32.totalorder %s702_s17, 1  ;;  %p704_p9 = scmp.ge.s32.totalorder %s1008_s15, 2 }
  0x12   : > { %p798_p10 = scmp.lt.s32.totalorder %s1008_s15, 2  ;;  %p1084_p11 = por %p118_p7, %p36_p0 }
  0x13   : > { %p1088_p12 = por %p124_p8, %p42_p3  ;;  %s1093_s25 = sand.u32 1, %s1004_s14  }
  0x14   : > { %s769_s26 = sshll.u32 %s1008_s15, 4  ;;  %s705_s27 = sshll.u32 %s1093_s25, 4 }
  0x15   : > { %p1097_p13 = pnand %p798_p10, %p38_p5  ;;  %s166_s29 = sand.u32 1, %s1008_s15  }
  0x16   : > { %s1299_s1 = sld [smem:[#allocation13_spill]]  ;;  %s170_s6 = scalar_lea.vmem [#allocation5], %s705_s27 }
  0x17   : > { %s178_s7 = sshll.u32 %s170_s6, 4  ;;  %p714_p0 = scmp.ge.s32.totalorder %s1008_s15, 1  ;;  %s179_s7 = int_to_ptr.vmem [resolvable:$true] %s178_s7 }
  0x18   : > { %s1110_s9 = scalar_lea.sflag [#allocation6], %s166_s29  ;;  %p848_p2 = pneg %p1097_p13 }
  0x1c   : > { %s175_s5 = scalar_lea.hbm %s1299_s1, %s769_s26  ;;  %s851_s20 = scalar_lea.hbm %s1299_s1, 32 }
  0x1d   : > { %s176_s8 = sshll.u32 %s175_s5, 4  ;;  %s177_s8 = int_to_ptr.hbm [resolvable:$true] %s176_s8 }
  0x1e   : > { %s844_s10 = sshra.s32 %s177_s8, 4  ;;  %s845_s10 = int_to_ptr.hbm [resolvable:$true] %s844_s10 }
  0x1f   : > { %s846_s11 = scalar_lea.hbm %s845_s10, 16  ;;  %p852_p5 = scmp.lt.s32.totalorder %s845_s10, %s1299_s1 }
  0x20   : > { %p847_p1 = scmp.ne.s32.totalorder %s845_s10, %s846_s11  ;;  %p853_p7 = scmp.lt.s32.totalorder %s851_s20, %s846_s11 }
  0x22   : > { %p849_p3 = pnand %p848_p2, %p847_p1  ;;  %p854_p8 = por %p853_p7, %p852_p5 }
  0x24   : > { %p850_p4 = pneg %p849_p3 }
  0x26   : > { %p855_p10 = pnand %p854_p8, %p850_p4 }
  0x28   : > { %858 = shalt.err (!%p855_p10)
}
  0x29   : > { %s1291_s29 = smov 128   ;;  %s1015_s5 = smov 8  }
  0x2a   : > { %790 = dma.hbm_to_vmem [thread:$0]  (!%p1097_p13), %s177_s8, 256, %s179_s7, %s1110_s9, %s1291_s29, %s1291_s29, %s1015_s5  }
  0x2b   : > { %p208_p1 = scmp.lt.s32.totalorder %s1008_s15, 3  ;;  %s153_s11 = scalar_lea.hbm %s1287_s0, %s769_s26 }
  0x2c   : > { %s154_s19 = sshll.u32 %s153_s11, 4  ;;  %s148_s20 = scalar_lea.vmem [#allocation2], %s705_s27  ;;  %s155_s19 = int_to_ptr.hbm [resolvable:$true] %s154_s19 }
  0x2d   : > { %p1137_p3 = pnand %p714_p0, %p208_p1  ;;  %s156_s30 = sshll.u32 %s148_s20, 4  ;;  %s157_s30 = int_to_ptr.vmem [resolvable:$true] %s156_s30 }
  0x2e   : > { %s711_s4 = sshll.u32 %s1093_s25, 6  ;;  %s145_s1 = scalar_lea.sflag [#allocation3], %s1093_s25 }
  0x2f   : > { %s874_s7 = sshra.s32 %s155_s19, 4  ;;  %s881_s10 = scalar_lea.hbm %s1287_s0, 32  ;;  %s875_s7 = int_to_ptr.hbm [resolvable:$true] %s874_s7 }
  0x30   : > { %s876_s8 = scalar_lea.hbm %s875_s7, 16  ;;  %p882_p0 = scmp.lt.s32.totalorder %s875_s7, %s1287_s0 }
  0x31   : > { %p877_p4 = scmp.ne.s32.totalorder %s875_s7, %s876_s8  ;;  %p883_p8 = scmp.lt.s32.totalorder %s881_s10, %s876_s8 }
  0x33   : > { %p879_p5 = pnand %p877_p4, %p848_p2  ;;  %p884_p10 = por %p883_p8, %p882_p0 }
  0x35   : > { %p880_p7 = pneg %p879_p5 }
  0x37   : > { %p885_p1 = pnand %p884_p10, %p880_p7 }
  0x39   : > { %888 = shalt.err (!%p885_p1)
}
  0x3a   : > { %s1301_s25 = smov 128   ;;  %s771_s27 = sshll.u32 %s1008_s15, 6 }
  0x3b   : > { %787 = dma.hbm_to_vmem [thread:$0]  (!%p1097_p13), %s155_s19, 256, %s157_s30, %s145_s1, %s1301_s25, %s1301_s25, %s1015_s5  }
  0x3c   : > { %s197_s6 = scalar_lea.hbm %s1289_s2, %s771_s27  ;;  %s192_s21 = scalar_lea.vmem [#allocation7], %s711_s4 }
  0x3d   : > { %s200_s29 = sshll.u32 %s192_s21, 4  ;;  %s198_s7 = sshll.u32 %s197_s6, 4  ;;  %s201_s29 = int_to_ptr.vmem [resolvable:$true] %s200_s29  ;;  %s199_s7 = int_to_ptr.hbm [resolvable:$true] %s198_s7 }
  0x3e   : > { %s904_s8 = sshra.s32 %s199_s7, 4  ;;  %s911_s19 = scalar_lea.hbm %s1289_s2, 128  ;;  %s905_s8 = int_to_ptr.hbm [resolvable:$true] %s904_s8 }
  0x3f   : > { %s906_s10 = scalar_lea.hbm %s905_s8, 64  ;;  %p912_p0 = scmp.lt.s32.totalorder %s905_s8, %s1289_s2 }
  0x40   : > { %p907_p4 = scmp.ne.s32.totalorder %s905_s8, %s906_s10  ;;  %p913_p8 = scmp.lt.s32.totalorder %s911_s19, %s906_s10 }
  0x42   : > { %p909_p5 = pnand %p907_p4, %p848_p2  ;;  %p914_p10 = por %p913_p8, %p912_p0 }
  0x44   : > { %p910_p7 = pneg %p909_p5 }
  0x46   : > { %p915_p1 = pnand %p914_p10, %p910_p7 }
  0x48   : > { %918 = shalt.err (!%p915_p1)
}
  0x49   : > { %793 = dma.hbm_to_vmem [thread:$0]  (!%p1097_p13), %s199_s7, 1024, %s201_s29, %s1110_s9, %s1301_s25, %s1301_s25, %s1015_s5  }
  0x4a   : > { %212 = sbr.rel (%p1137_p3) target bundleno = 416 (0x1a0), region = 32  ;;  %s1181_s21 = sand.u32 (!%p1137_p3), 1, %s1000_s13  }
  0x4b   : > { %s715_s4 = sshll.u32 (!%p1137_p3), %s1181_s21, 4  ;;  %s215_s27 = scalar_lea.sflag (!%p1137_p3), [#allocation3], %s1181_s21 }
  0x4c   : > { %s1185_s26 = scalar_lea.vmem (!%p1137_p3), [#allocation2], %s715_s4 }
  0x4f   : > { %983 = dma.done.wait (%p1077_p6), %s215_s27, 256  }
  0x50   : > { %985 = vsyncadd (%p1077_p6), %s215_s27, 4294967040  ;;  %s224_s28 = sand.u32 1, %s1059_s16   ;;  %s1192_s5 = scalar_lea.vmem [#allocation5], %s715_s4 }
  0x51   : > { %s225_s9 = scalar_lea.sflag [#allocation6], %s224_s28 }
  0x52   : > { %987 = dma.done.wait (%p1077_p6), %s225_s9, 1280  }
  0x53   : > { %989 = vsyncadd (%p1077_p6), %s225_s9, 4294966016  ;;  %s717_s17 = sshll.u32 %s1181_s21, 6  ;;  %s272_s25 = ssub.s32 2, %s1059_s16 }
  0x54   : > { %p273_p13 = scmp.lt.s32.totalorder %s272_s25, 1  ;;  %s1202_s29 = scalar_lea.vmem [#allocation7], %s717_s17 }
  0x55   : > { %s1204_s7 = scalar_lea.vmem [#allocation8], %s717_s17  ;;  %p772_p2 = scmp.le.s32.totalorder %s272_s25, 0 }
  0x56   : > { %s1200_s6 = scalar_select %p273_p13, %s272_s25, 1 }
  0x57   : > { %657 = sbr.rel (%p772_p2) target bundleno = 400 (0x190), region = 112  ;;  %s1206_s8 = smov (!%p772_p2), 0  }
  0x5c LB: >> { %s720_s22 = sshll.u32 %s1012_s8, 4  ;;  %s721_s10 = sshll.u32 %s1012_s8, 6  ;;  %vm292_vm0 = vcmask 130048   ;;  %s1012_s8 = sphi %s1206_s8, %s278_s8  }
  0x5d   : >> { %s285_s11 = scalar_lea.vmem %s1192_s5, %s720_s22 [#allocation5]  ;;  %s289_s1 = scalar_lea.vmem %s1202_s29, %s721_s10 [#allocation7] }
  0x5e   : >> { %v287_v0 = vld [vmem:[%s285_s11 + $0x8] sm:$0xff]  ;;  %v286_v1 = vld [vmem:[%s285_s11] sm:$0xff]  ;;  %v729_v2 = vld [vmem:[%s289_s1 + $0x10] sm:$0xff]  ;;  %s282_s19 = scalar_lea.vmem %s1185_s26, %s720_s22 [#allocation2]  ;;  %s353_s30 = scalar_lea.vmem %s1204_s7, %s721_s10 [#allocation8] }
  0x5f   : >> { %380 = vmatpush.msra.mxu2 %v287_v0  ;;  %313 = vmatpush.msra.mxu0 %v287_v0  ;;  %v290_v3 = vld [vmem:[%s289_s1] sm:$0xff]  ;;  %v730_v4 = vld [vmem:[%s289_s1 + $0x18] sm:$0xff]  ;;  %v291_v5 = vld [vmem:[%s289_s1 + $0x8] sm:$0xff]  ;;  %s278_s8 = sadd.s32 1, %s1012_s8  }
  0x60   : >> { %v753_v6 = vld [vmem:[%s289_s1 + $0x30] sm:$0xff]  ;;  %v741_v7 = vld [vmem:[%s289_s1 + $0x20] sm:$0xff]  ;;  %v754_v8 = vld [vmem:[%s289_s1 + $0x38] sm:$0xff]  ;;  %p277_p6 = scmp.ge.s32.totalorder %s278_s8, %s1200_s6 }
  0x61   : >> { %381 = vmatpush.msra.mxu2 %v286_v1  ;;  %314 = vmatpush.msra.mxu0 %v286_v1  ;;  %v742_v9 = vld [vmem:[%s289_s1 + $0x28] sm:$0xff]  ;;  %v283_v13 = vld [vmem:[%s282_s19] sm:$0xff] }
  0x62   : >> { %731 = vmatmul.msk.f32.vlgmr.msra.gmra.mxu2 %vm292_vm0, %v729_v2  ;;  %722 = vmatmul.msk.f32.vlgmr.msra.gmra.mxu0 %vm292_vm0, %v290_v3  ;;  %v284_v16 = vld [vmem:[%s282_s19 + $0x8] sm:$0xff] }
  0x63   : >> { %502 = vmatpush.msrb.mxu2 %v287_v0  ;;  %441 = vmatpush.msrb.mxu0 %v287_v0 }
  0x65   : >> { %503 = vmatpush.msrb.mxu2 %v286_v1  ;;  %442 = vmatpush.msrb.mxu0 %v286_v1 }
  0x6a   : >> { %732 = vmatmul.msk.f32.gmra.mxu2 %vm292_vm0, %v730_v4  ;;  %723 = vmatmul.msk.f32.gmra.mxu0 %vm292_vm0, %v291_v5 }
  0x72   : >> { %755 = vmatmul.msk.f32.vlgmr.msrb.gmra.mxu2 %vm292_vm0, %v753_v6  ;;  %743 = vmatmul.msk.f32.vlgmr.msrb.gmra.mxu0 %vm292_vm0, %v741_v7 }
  0x7a   : >> { %756 = vmatmul.msk.f32.gmra.mxu2 %vm292_vm0, %v754_v8  ;;  %744 = vmatmul.msk.f32.gmra.mxu0 %vm292_vm0, %v742_v9 }
  0xdf   : >> { %v316_v10 = vpop.f32.mrf.mxu0 }
  0xe5   : >> { %v383_v11 = vpop.f32.mrf.mxu2 }
  0xe7   : >> { %v319_v12 = vpop.f32.mrf.mxu0 }
  0xe8   : >> { %342 = vmatpush.msra.mxu1 %v319_v12 }
  0xea   : >> { %343 = vmatpush.msra.mxu1 %v316_v10 }
  0xeb   : >> { %724 = vmatmul.msk.f32.vlgmr.msra.gmra.mxu1 %vm292_vm0, %v283_v13 }
  0xed   : >> { %v386_v14 = vpop.f32.mrf.mxu2 }
  0xee   : >> { %403 = vmatpush.msra.mxu3 %v386_v14 }
  0xef   : >> { %v444_v15 = vpop.f32.mrf.mxu0 }
  0xf0   : >> { %404 = vmatpush.msra.mxu3 %v383_v11 }
  0xf1   : >> { %733 = vmatmul.msk.f32.vlgmr.msra.gmra.mxu3 %vm292_vm0, %v283_v13 }
  0xf3   : >> { %725 = vmatmul.msk.f32.gmra.mxu1 %vm292_vm0, %v284_v16 }
  0xf5   : >> { %v505_v17 = vpop.f32.mrf.mxu2 }
  0xf7   : >> { %v447_v18 = vpop.f32.mrf.mxu0 }
  0xf8   : >> { %464 = vmatpush.msrb.mxu1 %v447_v18 }
  0xf9   : >> { %734 = vmatmul.msk.f32.gmra.mxu3 %vm292_vm0, %v284_v16 }
  0xfa   : >> { %465 = vmatpush.msrb.mxu1 %v444_v15 }
  0xfb   : >> { %745 = vmatmul.msk.f32.vlgmr.msrb.gmra.mxu1 %vm292_vm0, %v283_v13 }
  0xfd   : >> { %v508_v19 = vpop.f32.mrf.mxu2 }
  0xfe   : >> { %525 = vmatpush.msrb.mxu3 %v508_v19 }
 0x100   : >> { %526 = vmatpush.msrb.mxu3 %v505_v17 }
 0x101   : >> { %757 = vmatmul.msk.f32.vlgmr.msrb.gmra.mxu3 %vm292_vm0, %v283_v13 }
 0x103   : >> { %746 = vmatmul.msk.f32.gmra.mxu1 %vm292_vm0, %v284_v16 }
 0x109   : >> { %758 = vmatmul.msk.f32.gmra.mxu3 %vm292_vm0, %v284_v16 }
 0x168   : >> { %v345_v20 = vpop.f32.mrf.mxu1 }
 0x169   : >> { %v726_v21 = vadd.f32 -0.5, %v345_v20 }
 0x16b   : >> { %354 = vst.msk [vmem:[%s353_s30] sm:$0xff] %vm292_vm0, %v726_v21 }
 0x170   : >> { %v348_v22 = vpop.f32.mrf.mxu1 }
 0x171   : >> { %v727_v23 = vadd.f32 -0.5, %v348_v22 }
 0x173   : >> { %355 = vst.msk [vmem:[%s353_s30 + $0x8] sm:$0xff] %vm292_vm0, %v727_v23 }
 0x174   : >> { %v406_v24 = vpop.f32.mrf.mxu3 }
 0x175   : >> { %v735_v25 = vadd.f32 -0.5, %v406_v24 }
 0x177   : >> { %738 = vst.msk [vmem:[%s353_s30 + $0x10] sm:$0xff] %vm292_vm0, %v735_v25 }
 0x178   : >> { %v467_v26 = vpop.f32.mrf.mxu1 }
 0x179   : >> { %v747_v27 = vadd.f32 -0.5, %v467_v26 }
 0x17b   : >> { %750 = vst.msk [vmem:[%s353_s30 + $0x20] sm:$0xff] %vm292_vm0, %v747_v27 }
 0x17c   : >> { %v409_v28 = vpop.f32.mrf.mxu3 }
 0x17d   : >> { %v736_v29 = vadd.f32 -0.5, %v409_v28 }
 0x17f   : >> { %739 = vst.msk [vmem:[%s353_s30 + $0x18] sm:$0xff] %vm292_vm0, %v736_v29 }
 0x180   : >> { %v470_v30 = vpop.f32.mrf.mxu1 }
 0x181   : >> { %v748_v31 = vadd.f32 -0.5, %v470_v30 }
 0x183   : >> { %751 = vst.msk [vmem:[%s353_s30 + $0x28] sm:$0xff] %vm292_vm0, %v748_v31 }
 0x184   : >> { %v528_v32 = vpop.f32.mrf.mxu3 }
 0x185   : >> { %v759_v33 = vadd.f32 -0.5, %v528_v32 }
 0x187   : >> { %762 = vst.msk [vmem:[%s353_s30 + $0x30] sm:$0xff] %vm292_vm0, %v759_v33 }
 0x18b   : > { %280 = sbr.rel (!%p277_p6) target bundleno = 92 (0x5c), region = 118 }
 0x18c   : >> { %v531_v34 = vpop.f32.mrf.mxu3 }
 0x18d   : >> { %v760_v35 = vadd.f32 -0.5, %v531_v34 }
 0x18f   : >> { %763 = vst.msk [vmem:[%s353_s30 + $0x38] sm:$0xff] %vm292_vm0, %v760_v35 }
 0x190 PF: > { %s775_s20 = sshll.u32 %s1059_s16, 6  ;;  %s552_s9 = sshll.u32 %s1204_s7, 4  ;;  %s553_s9 = int_to_ptr.vmem [resolvable:$true] %s552_s9 }
 0x191   : > { %s551_s28 = scalar_lea.hbm %s1290_s3, %s775_s20  ;;  %s540_s25 = scalar_lea.sflag [#allocation4], %s1181_s21 }
 0x192   : > { %s554_s17 = sshll.u32 %s551_s28, 4  ;;  %s954_s16 = scalar_lea.hbm %s1290_s3, 128  ;;  %s555_s17 = int_to_ptr.hbm [resolvable:$true] %s554_s17 }
 0x193   : > { %s948_s22 = sshra.s32 %s555_s17, 4  ;;  %s949_s22 = int_to_ptr.hbm [resolvable:$true] %s948_s22 }
 0x194   : > { %s950_s10 = scalar_lea.hbm %s949_s22, 64  ;;  %p955_p7 = scmp.lt.s32.totalorder %s949_s22, %s1290_s3 }
 0x195   : > { %p951_p3 = scmp.ne.s32.totalorder %s949_s22, %s950_s10  ;;  %p956_p0 = scmp.lt.s32.totalorder %s954_s16, %s950_s10 }
 0x197   : > { %p952_p4 = pnand %p951_p3, %p1084_p11  ;;  %p957_p8 = por %p956_p0, %p955_p7 }
 0x199   : > { %p953_p5 = pneg %p952_p4 }
 0x19b   : > { %p958_p10 = pnand %p957_p8, %p953_p5 }
 0x19d   : > { %961 = shalt.err (!%p958_p10)
}
 0x19e   : > { %s1016_s21 = smov 128   ;;  %s1017_s7 = smov 8  }
 0x19f   : > { %782 = dma.vmem_to_hbm [thread:$0]  (%p1084_p11), %s553_s9, 1024, %s555_s17, %s540_s25, %s1016_s21, %s1016_s21, %s1017_s7  }
 0x1a0 PF: > { %s569_s8 = sand.u32 1, %s996_s12   ;;  %p795_p1 = pnand %p704_p9, %p1088_p12 }
 0x1a1   : > { %s570_s11 = scalar_lea.sflag [#allocation4], %s569_s8 }
 0x1a2   : > { %p796_p13 = pneg %p795_p1 }
 0x1a4   : > { %991 = dma.done.wait (%p796_p13), %s570_s11, 1024  }
 0x1a5   : > { %993 = vsyncadd (%p796_p13), %s570_s11, 4294966272  ;;  %s1302_s1 = sld [smem:[#allocation12_spill]]  ;;  %p19_p2 = scmp.ge.s32.totalorder %s1063_s18, 4  }
 0x1a6   : > { %s1303_s12 = smov %s1000_s13  ;;  %s1304_s13 = smov %s1004_s14 }
 0x1a7   : > { %s1306_s15 = smov %s1063_s18  ;;  %21 = sbr.rel (!%p19_p2) target bundleno = 9 (0x9), region = 129 }
 0x1ab   : > { %s1305_s14 = smov %s1302_s1 }
 0x1ac   :  { %576 = vsyncpa [#allocation3], 1 }
 0x1ad   :  { %578 = vsyncpa [#allocation3 + $0x1], 1 }
 0x1ae   :  { %579 = vsyncpa [#allocation6], 1 }
 0x1af   :  { %581 = vsyncpa [#allocation6 + $0x1], 1 }
 0x1b0   :  { %582 = vsyncpa [#allocation4], 1 }
 0x1b1   :  { %584 = vsyncpa [#allocation4 + $0x1], 1 }

</bundles_post_ra>
